<compile_context>
chip_gen: v7x
topology: tpu7x:2x2x1
jax: 0.10.0
libtpu: 0.0.40
codegen_flags: <defaults>
</compile_context>

<pallas_src>
import functools

import jax
import jax.numpy as jnp
from jax import lax
from jax.experimental import pallas as pl
from jax.experimental.pallas import tpu as pltpu


# ---------------------------------------------------------------------------
# Pass 1: fused 1x1-conv projections  qkv = x @ [Wq | Wk | Wv] + b   (bf16 out)
# ---------------------------------------------------------------------------
def proj_kernel(x_ref, w_ref, b_ref, q_ref, k_ref, v_ref, *, Cr):
    x = x_ref[0].astype(jnp.bfloat16)                       # (tr, C) bf16 tile
    qkv = jnp.dot(x, w_ref[...],                            # bf16 x bf16 -> f32
                  preferred_element_type=jnp.float32) + b_ref[...]
    q_ref[0] = qkv[:, :Cr].astype(jnp.bfloat16)
    k_ref[0] = qkv[:, Cr:2 * Cr].astype(jnp.bfloat16)
    v_ref[0] = qkv[:, 2 * Cr:].astype(jnp.bfloat16)


# ---------------------------------------------------------------------------
# Pass 2: row-stripe-tiled criss-cross attention (joint softmax over H+W keys)
# ---------------------------------------------------------------------------
def cca_attn_kernel(q_ref, k_ref, kt_ref, v_ref, vt_ref, x_ref, gamma_ref, o_ref):
    th = q_ref.shape[1]            # stripe height
    H = kt_ref.shape[2]            # full image height
    f32 = jnp.float32

    q = q_ref[0]                   # (th, W, Cr) bf16  stripe rows, row-leading
    k_row = k_ref[0]               # (th, W, Cr) bf16  stripe rows (row-pass keys)
    k_col = kt_ref[0]              # (W,  H, Cr) bf16  full image, W-leading
    v_row = v_ref[0]               # (th, W, C ) bf16  stripe rows (row-pass values)
    v_col = vt_ref[0]              # (W,  H, C ) bf16  full image, W-leading

    # ---- energies: bf16 MXU, f32 accumulation ------------------------------
    # row pass:    e_w[i, j, t] = <q[i, j, :], k[i, t, :]>
    e_w = lax.dot_general(q, k_row, (((2,), (2,)), ((0,), (0,))),
                          preferred_element_type=f32)              # (th, W, W)
    # column pass: e_h[j, i, p] = <q[i, j, :], k[p, j, :]>   (W-leading batch)
    q_t = jnp.transpose(q, (1, 0, 2))                               # (W, th, Cr) small
    e_h = lax.dot_general(q_t, k_col, (((2,), (2,)), ((0,), (0,))),
                          preferred_element_type=f32)              # (W, th, H)

    # diagonal (p == global row index) handled on p, never via -inf energies
    row0 = pl.program_id(1) * th
    ii = lax.broadcasted_iota(jnp.int32, (1, th, H), 1) + row0
    pp = lax.broadcasted_iota(jnp.int32, (1, th, H), 2)
    diag = ii == pp                                                 # (1, th, H)

    # ---- joint softmax over the H + W criss-cross entries ------------------
    neg = jnp.finfo(f32).min
    m_h = jnp.transpose(
        jnp.max(jnp.where(diag, neg, e_h), axis=-1, keepdims=True), (1, 0, 2))
    m = jnp.maximum(jnp.max(e_w, axis=-1, keepdims=True), m_h)      # (th, W, 1)
    m_t = jnp.transpose(m, (1, 0, 2))                               # (W, th, 1)
    p_w = jnp.exp(e_w - m)                                          # (th, W, W) f32
    p_h = jnp.where(diag, 0.0, jnp.exp(e_h - m_t))                  # (W, th, H) f32
    denom = (jnp.sum(p_w, axis=-1, keepdims=True)
             + jnp.transpose(jnp.sum(p_h, axis=-1, keepdims=True), (1, 0, 2)))

    # ---- P @ V: bf16 MXU, f32 accumulation ----------------------------------
    out_w = lax.dot_general(p_w.astype(jnp.bfloat16), v_row,
                            (((2,), (1,)), ((0,), (0,))),
                            preferred_element_type=f32)             # (th, W, C)
    out_h = lax.dot_general(p_h.astype(jnp.bfloat16), v_col,
                            (((2,), (1,)), ((0,), (0,))),
                            preferred_element_type=f32)             # (W, th, C)
    ssum = out_w + jnp.transpose(out_h, (1, 0, 2))                  # (th, W, C)

    # single normalization: EUP approx reciprocal + one Newton step (~exact)
    inv = pl.reciprocal(denom, approx=True)
    inv = inv * (2.0 - denom * inv)

    gamma = gamma_ref[0, 0]
    o_ref[0] = (gamma * (ssum * inv) + x_ref[0].astype(f32)).astype(o_ref.dtype)


def _largest_divisor(n, target):
    t = max(1, min(target, n))
    while n % t:
        t -= 1
    return t


def criss_cross_attention(x_nhwc, params, *, row_tile=512, stripe=8):
    """CCNet criss-cross attention.  x_nhwc: (B, H, W, C) -> (B, H, W, C)."""
    B, H, W, C = x_nhwc.shape
    Cr = params['wq'].shape[0]
    F = 2 * Cr + C

    # fused, pre-transposed projection weights (bf16 for the MXU) + f32 bias
    w_fused = jnp.concatenate(
        [params['wq'].T, params['wk'].T, params['wv'].T], axis=1).astype(jnp.bfloat16)
    b_fused = jnp.concatenate(
        [params['bq'], params['bk'], params['bv']], axis=1).astype(jnp.float32)  # (1, F)

    # -------- pass 1: row-tiled fused QKV projection (bf16 q/k/v to HBM) ----
    x_flat = x_nhwc.reshape(B, H * W, C)                     # free reshape
    tr = _largest_divisor(H * W, row_tile)
    nr = (H * W) // tr
    proj = pl.pallas_call(
        functools.partial(proj_kernel, Cr=Cr),
        out_shape=(jax.ShapeDtypeStruct((B, H * W, Cr), jnp.bfloat16),
                   jax.ShapeDtypeStruct((B, H * W, Cr), jnp.bfloat16),
                   jax.ShapeDtypeStruct((B, H * W, C), jnp.bfloat16)),
        grid=(B, nr),
        in_specs=[
            pl.BlockSpec((1, tr, C), lambda b, r: (b, r, 0)),
            pl.BlockSpec((C, F), lambda b, r: (0, 0)),
            pl.BlockSpec((1, F), lambda b, r: (0, 0)),
        ],
        out_specs=(pl.BlockSpec((1, tr, Cr), lambda b, r: (b, r, 0)),
                   pl.BlockSpec((1, tr, Cr), lambda b, r: (b, r, 0)),
                   pl.BlockSpec((1, tr, C), lambda b, r: (b, r, 0))),
        compiler_params=pltpu.CompilerParams(
            dimension_semantics=("parallel", "parallel"),
            vmem_limit_bytes=64 * 1024 * 1024),
        cost_estimate=pl.CostEstimate(
            flops=2 * B * H * W * C * F, transcendentals=0,
            bytes_accessed=B * H * W * C * 4 + C * F * 2 + F * 4 + B * H * W * F * 2),
    )
    q, k, v = proj(x_flat, w_fused, b_fused)
    q = q.reshape(B, H, W, Cr)
    k = k.reshape(B, H, W, Cr)
    v = v.reshape(B, H, W, C)

    # One wrapper-side HBM transpose per tensor gives the column pass its
    # W-leading operands (replaces the per-image in-kernel q_t/k_t/v_t copies).
    k_t = jnp.transpose(k, (0, 2, 1, 3))                     # (B, W, H, Cr)
    v_t = jnp.transpose(v, (0, 2, 1, 3))                     # (B, W, H, C)

    # -------- pass 2: row-stripe-tiled criss-cross attention ----------------
    # TODO(synk): for production sizes (e.g. H=W=97) pad H/W wrapper-side to
    # sublane/lane multiples and mask the padded keys so the energy/probability
    # tensors stay lane-dense; omitted at these toy shapes.
    th = _largest_divisor(H, stripe)
    ns = H // th
    attn = pl.pallas_call(
        cca_attn_kernel,
        out_shape=jax.ShapeDtypeStruct((B, H, W, C), x_nhwc.dtype),
        grid=(B, ns),
        in_specs=[
            pl.BlockSpec((1, th, W, Cr), lambda b, s: (b, s, 0, 0)),  # q stripe
            pl.BlockSpec((1, th, W, Cr), lambda b, s: (b, s, 0, 0)),  # k stripe (row pass)
            pl.BlockSpec((1, W, H, Cr), lambda b, s: (b, 0, 0, 0)),   # k_t full (col pass)
            pl.BlockSpec((1, th, W, C), lambda b, s: (b, s, 0, 0)),   # v stripe (row pass)
            pl.BlockSpec((1, W, H, C), lambda b, s: (b, 0, 0, 0)),    # v_t full (col pass)
            pl.BlockSpec((1, th, W, C), lambda b, s: (b, s, 0, 0)),   # x stripe (residual)
            pl.BlockSpec(memory_space=pltpu.MemorySpace.SMEM),        # gamma scalar
        ],
        out_specs=pl.BlockSpec((1, th, W, C), lambda b, s: (b, s, 0, 0)),
        compiler_params=pltpu.CompilerParams(
            dimension_semantics=("parallel", "parallel"),
            vmem_limit_bytes=64 * 1024 * 1024),
        cost_estimate=pl.CostEstimate(
            flops=B * (2 * H * W * Cr * (H + W) + 2 * H * W * C * (H + W)),
            transcendentals=B * H * W * (H + W),
            bytes_accessed=(B * H * W * (2 * Cr + C) * 2     # q/k/v stripe streams (bf16)
                            + B * H * W * (Cr + C) * 2       # resident k_t / v_t (bf16)
                            + 2 * B * H * W * C * 4)),       # x read + out write (f32)
    )
    return attn(q, k, k_t, v, v_t, x_nhwc, params['gamma'])


def cca_reference(x_nchw, params):
    """Pure-JAX f32 transcription of the PyTorch forward (NCHW), for checking."""
    b, c, h, w = x_nchw.shape
    q = jnp.einsum('bchw,dc->bdhw', x_nchw, params['wq']) + params['bq'][0][None, :, None, None]
    k = jnp.einsum('bchw,dc->bdhw', x_nchw, params['wk']) + params['bk'][0][None, :, None, None]
    v = jnp.einsum('bchw,dc->bdhw', x_nchw, params['wv']) + params['bv'][0][None, :, None, None]
    e_h = jnp.einsum('bdij,bdpj->bijp', q, k)
    mask = jnp.eye(h, dtype=bool)[None, :, None, :]
    e_h = jnp.where(mask, -jnp.inf, e_h)
    e_w = jnp.einsum('bdij,bdit->bijt', q, k)
    attn = jax.nn.softmax(jnp.concatenate([e_h, e_w], axis=-1), axis=-1)
    a_h, a_w = attn[..., :h], attn[..., h:]
    out_h = jnp.einsum('bijp,bdpj->bdij', a_h, v)
    out_w = jnp.einsum('bijt,bdit->bdij', a_w, v)
    return params['gamma'][0, 0] * (out_h + out_w) + x_nchw


if __name__ == "__main__":
    # PyTorch module uses NCHW; in_channels must be >= 8 (channels = C // 8).
    B, C, H, W = 2, 32, 16, 16
    Cr = C // 8

    key = jax.random.PRNGKey(0)
    kx, kq, kk, kv, kbq, kbk, kbv = jax.random.split(key, 7)
    x_nchw = jax.random.normal(kx, (B, C, H, W), jnp.float32)

    params = dict(
        wq=jax.random.normal(kq, (Cr, C), jnp.float32) * 0.1,   # ConvQuery weight (1x1)
        bq=jax.random.normal(kbq, (1, Cr), jnp.float32) * 0.1,  # ConvQuery bias
        wk=jax.random.normal(kk, (Cr, C), jnp.float32) * 0.1,   # ConvKey weight
        bk=jax.random.normal(kbk, (1, Cr), jnp.float32) * 0.1,  # ConvKey bias
        wv=jax.random.normal(kv, (C, C), jnp.float32) * 0.1,    # ConvValue weight
        bv=jax.random.normal(kbv, (1, C), jnp.float32) * 0.1,   # ConvValue bias
        gamma=jnp.zeros((1, 1), jnp.float32),                   # module __init__: gamma = 0
    )

    x_nhwc = jnp.transpose(x_nchw, (0, 2, 3, 1))

    # Default gamma (= 0): output must equal the input (residual-only path, f32 exact).
    out0 = criss_cross_attention(x_nhwc, params)
    jax.block_until_ready(out0)
    assert jnp.allclose(out0, x_nhwc, atol=1e-6), "gamma=0 residual path mismatch"

    # Nonzero gamma exercises the attention path; compare against the f32 reference
    # (the kernel runs the attention math in bf16 with f32 accumulation).
    params_nz = dict(params, gamma=jnp.full((1, 1), 0.5, jnp.float32))
    out_nchw = jnp.transpose(criss_cross_attention(x_nhwc, params_nz), (0, 3, 1, 2))
    ref_nchw = cca_reference(x_nchw, params_nz)
    jax.block_until_ready(out_nchw)
    assert jnp.allclose(out_nchw, ref_nchw, atol=3e-2, rtol=3e-2), \
        "Pallas kernel mismatch vs reference"

    print("KERNEL_OK")
</pallas_src>

<mosaic_0001>
module attributes {stable_mosaic.version = 11 : i64} {
  func.func @proj_kernel(%arg0: i32, %arg1: i32, %arg2: memref<1x256x32xf32, #tpu.memory_space<vmem>>, %arg3: memref<32x40xbf16, #tpu.memory_space<vmem>>, %arg4: memref<1x40xf32, #tpu.memory_space<vmem>>, %arg5: memref<1x256x4xbf16, #tpu.memory_space<vmem>>, %arg6: memref<1x256x4xbf16, #tpu.memory_space<vmem>>, %arg7: memref<1x256x32xbf16, #tpu.memory_space<vmem>>) attributes {dimension_semantics = [#tpu.dimension_semantics<parallel>, #tpu.dimension_semantics<parallel>], iteration_bounds = array<i64: 2, 1>, scalar_prefetch = 0 : i64, scratch_operands = 0 : i64, tpu.core_type = #tpu.core_type<tc>, window_params = [{transform_indices = @transform_0, window_bounds = array<i64: 1, 256, 32>}, {pipeline_mode = #tpu.pipeline_mode<synchronous>, transform_indices = @transform_1, window_bounds = array<i64: 32, 40>}, {pipeline_mode = #tpu.pipeline_mode<synchronous>, transform_indices = @transform_2, window_bounds = array<i64: 1, 40>}, {transform_indices = @transform_3, window_bounds = array<i64: 1, 256, 4>}, {transform_indices = @transform_4, window_bounds = array<i64: 1, 256, 4>}, {transform_indices = @transform_5, window_bounds = array<i64: 1, 256, 32>}]} {
    %c0 = arith.constant 0 : index
    %c0_0 = arith.constant 0 : index
    %c0_1 = arith.constant 0 : index
    %0 = vector.load %arg2[%c0, %c0_0, %c0_1] : memref<1x256x32xf32, #tpu.memory_space<vmem>>, vector<1x256x32xf32>
    %1 = vector.shape_cast %0 : vector<1x256x32xf32> to vector<256x32xf32>
    %2 = arith.truncf %1 : vector<256x32xf32> to vector<256x32xbf16>
    %c0_2 = arith.constant 0 : index
    %c0_3 = arith.constant 0 : index
    %3 = vector.load %arg3[%c0_2, %c0_3] : memref<32x40xbf16, #tpu.memory_space<vmem>>, vector<32x40xbf16>
    %cst = arith.constant dense<0.000000e+00> : vector<256x40xf32>
    %4 = tpu.matmul %2, %3, %cst {dimension_numbers = #tpu.dot_dimension_numbers<[1], [0], [0], [1], [0, 0, 1, 1], [], []>} : vector<256x32xbf16>, vector<32x40xbf16>, vector<256x40xf32> -> vector<256x40xf32>
    %c0_4 = arith.constant 0 : index
    %c0_5 = arith.constant 0 : index
    %5 = vector.load %arg4[%c0_4, %c0_5] : memref<1x40xf32, #tpu.memory_space<vmem>>, vector<1x40xf32>
    %6 = vector.broadcast %5 : vector<1x40xf32> to vector<256x40xf32>
    %7 = arith.addf %4, %6 : vector<256x40xf32>
    %8 = vector.extract_strided_slice %7 {offsets = [0, 0], sizes = [256, 4], strides = [1, 1]} : vector<256x40xf32> to vector<256x4xf32>
    %9 = arith.truncf %8 : vector<256x4xf32> to vector<256x4xbf16>
    %c0_6 = arith.constant 0 : index
    %c0_7 = arith.constant 0 : index
    %c0_8 = arith.constant 0 : index
    %10 = vector.load %arg5[%c0_6, %c0_7, %c0_8] : memref<1x256x4xbf16, #tpu.memory_space<vmem>>, vector<1x256x4xbf16>
    %11 = vector.shape_cast %10 : vector<1x256x4xbf16> to vector<256x4xbf16>
    %12 = vector.shape_cast %9 : vector<256x4xbf16> to vector<1x256x4xbf16>
    tpu.vector_store %arg5[%c0_6, %c0_7, %c0_8], %12 {strides = array<i32>} : memref<1x256x4xbf16, #tpu.memory_space<vmem>>, vector<1x256x4xbf16>,
    %13 = vector.extract_strided_slice %7 {offsets = [0, 4], sizes = [256, 4], strides = [1, 1]} : vector<256x40xf32> to vector<256x4xf32>
    %14 = arith.truncf %13 : vector<256x4xf32> to vector<256x4xbf16>
    %c0_9 = arith.constant 0 : index
    %c0_10 = arith.constant 0 : index
    %c0_11 = arith.constant 0 : index
    %15 = vector.load %arg6[%c0_9, %c0_10, %c0_11] : memref<1x256x4xbf16, #tpu.memory_space<vmem>>, vector<1x256x4xbf16>
    %16 = vector.shape_cast %15 : vector<1x256x4xbf16> to vector<256x4xbf16>
    %17 = vector.shape_cast %14 : vector<256x4xbf16> to vector<1x256x4xbf16>
    tpu.vector_store %arg6[%c0_9, %c0_10, %c0_11], %17 {strides = array<i32>} : memref<1x256x4xbf16, #tpu.memory_space<vmem>>, vector<1x256x4xbf16>,
    %18 = vector.extract_strided_slice %7 {offsets = [0, 8], sizes = [256, 32], strides = [1, 1]} : vector<256x40xf32> to vector<256x32xf32>
    %19 = arith.truncf %18 : vector<256x32xf32> to vector<256x32xbf16>
    %c0_12 = arith.constant 0 : index
    %c0_13 = arith.constant 0 : index
    %c0_14 = arith.constant 0 : index
    %20 = vector.load %arg7[%c0_12, %c0_13, %c0_14] : memref<1x256x32xbf16, #tpu.memory_space<vmem>>, vector<1x256x32xbf16>
    %21 = vector.shape_cast %20 : vector<1x256x32xbf16> to vector<256x32xbf16>
    %22 = vector.shape_cast %19 : vector<256x32xbf16> to vector<1x256x32xbf16>
    tpu.vector_store %arg7[%c0_12, %c0_13, %c0_14], %22 {strides = array<i32>} : memref<1x256x32xbf16, #tpu.memory_space<vmem>>, vector<1x256x32xbf16>,
    return
  }
  func.func @transform_0(%arg0: i32, %arg1: i32) -> (i32, i32, i32) {
    %c0_i32 = arith.constant 0 : i32
    %c0_i32_0 = arith.constant 0 : i32
    return %arg0, %arg1, %c0_i32 : i32, i32, i32
  }
  func.func @transform_1(%arg0: i32, %arg1: i32) -> (i32, i32) {
    %c0_i32 = arith.constant 0 : i32
    %c0_i32_0 = arith.constant 0 : i32
    %c0_i32_1 = arith.constant 0 : i32
    return %c0_i32, %c0_i32_0 : i32, i32
  }
  func.func @transform_2(%arg0: i32, %arg1: i32) -> (i32, i32) {
    %c0_i32 = arith.constant 0 : i32
    %c0_i32_0 = arith.constant 0 : i32
    %c0_i32_1 = arith.constant 0 : i32
    return %c0_i32, %c0_i32_0 : i32, i32
  }
  func.func @transform_3(%arg0: i32, %arg1: i32) -> (i32, i32, i32) {
    %c0_i32 = arith.constant 0 : i32
    %c0_i32_0 = arith.constant 0 : i32
    return %arg0, %arg1, %c0_i32 : i32, i32, i32
  }
  func.func @transform_4(%arg0: i32, %arg1: i32) -> (i32, i32, i32) {
    %c0_i32 = arith.constant 0 : i32
    %c0_i32_0 = arith.constant 0 : i32
    return %arg0, %arg1, %c0_i32 : i32, i32, i32
  }
  func.func @transform_5(%arg0: i32, %arg1: i32) -> (i32, i32, i32) {
    %c0_i32 = arith.constant 0 : i32
    %c0_i32_0 = arith.constant 0 : i32
    return %arg0, %arg1, %c0_i32 : i32, i32, i32
  }
}

</mosaic_0001>

<bundles_post_ra>
// kernel: tpu_custom_call.1
= control target key start
LH: loop header
LB: loop body
LE: loop exit
PB: predicated region body
PF: predicated region fallthrough
CT: control target
= control target key end

     0   :  { %11 = vsyncpa [#allocation3], 0  ;;  %s2618_s0 = inlined_call_operand.hbm [shape: f32[2,256,32], index: 0, kind: input, shape index: {}]   ;;  %s2619_s1 = inlined_call_operand.hbm [shape: bf16[32,40], index: 1, kind: input, shape index: {}]   ;;  %s2620_s2 = inlined_call_operand.hbm [shape: f32[1,40], index: 2, kind: input, shape index: {}]   ;;  %s2621_s3 = inlined_call_operand.hbm [shape: bf16[2,256,4], index: 3, kind: output, shape index: {0}]   ;;  %s2622_s4 = inlined_call_operand.hbm [shape: bf16[2,256,4], index: 4, kind: output, shape index: {1}]   ;;  %s2623_s5 = inlined_call_operand.hbm [shape: bf16[2,256,32], index: 5, kind: output, shape index: {2}]  }
   0x1   :  { %13 = vsyncpa [#allocation3 + $0x1], 0 }
   0x2   :  { %14 = vsyncpa [#allocation6], 0 }
   0x3   :  { %15 = vsyncpa [#allocation4], 0 }
   0x4   :  { %17 = vsyncpa [#allocation4 + $0x1], 0 }
   0x5   :  { %18 = vsyncpa [#allocation10], 0 }
   0x6   :  { %20 = vsyncpa [#allocation10 + $0x1], 0  ;;  %s1802_s18 = smov 0   ;;  %s1804_s19 = smov 0  }
   0x7   :  { %s1806_s20 = smov 0   ;;  %s1808_s21 = smov 0  }
   0x8   :  { %s1810_s22 = smov 0   ;;  %s1812_s23 = smov 0  }
   0x9 LB: > { %s1833_s24 = sadd.s32 4294967295, %s1756_s23   ;;  %s2627_s25 = sadd.s32 4294967294, %s1756_s23   ;;  %s1756_s23 = sphi %s1812_s23, %s26_s23   ;;  %s1752_s22 = sphi %s1810_s22, %s2649_s22   ;;  %s1748_s21 = sphi %s1808_s21, %s2648_s21   ;;  %s1744_s20 = sphi %s1806_s20, %s2647_s20   ;;  %s1740_s19 = sphi %s1804_s19, %s2646_s19   ;;  %s1736_s18 = sphi %s1802_s18, %s2645_s18  }
   0xa   : > { %p60_p0 = scmp.ne.s32.totalorder %s1740_s19, %s1736_s18  ;;  %p2624_p1 = scmp.eq.s32.totalorder %s1833_s24, 0 }
   0xb   : > { %p134_p3 = scmp.eq.s32.totalorder %s2627_s25, 1  ;;  %p1251_p5 = scmp.ge.s32.totalorder %s1756_s23, 1 }
   0xc   : > { %p1844_p4 = por %p2624_p1, %p60_p0  ;;  %p197_p7 = scmp.lt.s32.totalorder %s1756_s23, 3 }
   0xd   : > { %p1849_p6 = por %p134_p3, %p60_p0  ;;  %s1758_s29 = smov [#allocation5]  }
   0xe   : > { %s2630_s26 = scalar_select %p1844_p4, 1, 0 }
   0xf   : > { %s2631_s27 = scalar_select %p1849_p6, 1, 0 }
  0x10   : > { %p1854_p8 = pnand %p1251_p5, %p197_p7  ;;  %s209_s30 = sshll.u32 %s1758_s29, 4  ;;  %s1858_s30 = int_to_ptr.vmem [resolvable:$true] %s209_s30 }
  0x11   : > { %s1759_s7 = smov [#allocation7]   ;;  %s1524_s11 = scalar_lea.hbm %s2619_s1, 256 }
  0x12   : > { %p1437_p9 = pneg %p1854_p8  ;;  %s223_s8 = sshll.u32 %s1759_s7, 4  ;;  %s1869_s8 = int_to_ptr.vmem [resolvable:$true] %s223_s8 }
  0x13   : > { %p1525_p12 = scmp.ne.s32.totalorder %s2619_s1, %s1524_s11  ;;  %p1531_p5 = scmp.lt.u32.totalorder %s1524_s11, %s2619_s1 }
  0x14   : > { %p1865_p11 = pnand %p1437_p9, %p2624_p1 }
  0x16   : > { %p1526_p13 = pneg %p1865_p11 }
  0x18   : > { %p1527_p0 = pnand %p1526_p13, %p1525_p12 }
  0x1a   : > { %p1528_p3 = pneg %p1527_p0 }
  0x1c   : > { %p1533_p7 = pnand %p1531_p5, %p1528_p3 }
  0x1e   : > { %1536 = shalt.err (!%p1533_p7)
}
  0x1f   : > { %s1537_s16 = scalar_lea.vmem %s1858_s30, 256  ;;  %p1545_p2 = scmp.lt.s32.totalorder %s1858_s30, %s1858_s30 }
  0x20   : > { %p1538_p9 = scmp.ne.s32.totalorder %s1858_s30, %s1537_s16  ;;  %p1546_p12 = scmp.lt.s32.totalorder %s1537_s16, %s1537_s16 }
  0x22   : > { %p1540_p10 = pnand %p1538_p9, %p1526_p13  ;;  %p1547_p0 = por %p1546_p12, %p1545_p2 }
  0x24   : > { %p1541_p1 = pneg %p1540_p10 }
  0x26   : > { %p1548_p6 = pnand %p1547_p0, %p1541_p1 }
  0x28   : > { %1551 = shalt.err (!%p1548_p6)
}
  0x29   : > { %s1760_s17 = smov 64   ;;  %s1761_s29 = smov 4  }
  0x2a   : > { %1440 = dma.hbm_to_vmem [thread:$0]  (!%p1865_p11), %s2619_s1, 256, %s1858_s30, [#allocation6], %s1760_s17, %s1760_s17, %s1761_s29  }
  0x2b   : > { %s1552_s12 = scalar_lea.hbm %s2620_s2, 16 }
  0x2c   : > { %p1553_p2 = scmp.ne.s32.totalorder %s2620_s2, %s1552_s12  ;;  %p1559_p10 = scmp.lt.u32.totalorder %s1552_s12, %s2620_s2 }
  0x2e   : > { %p1555_p1 = pnand %p1553_p2, %p1526_p13 }
  0x30   : > { %p1556_p6 = pneg %p1555_p1 }
  0x32   : > { %p1561_p3 = pnand %p1559_p10, %p1556_p6 }
  0x34   : > { %1564 = shalt.err (!%p1561_p3)
}
  0x35   : > { %s1565_s30 = scalar_lea.vmem %s1869_s8, 16  ;;  %s1572_s17 = scalar_lea.vmem %s1869_s8, 32 }
  0x36   : > { %p1566_p5 = scmp.ne.s32.totalorder %s1869_s8, %s1565_s30  ;;  %p1573_p12 = scmp.lt.s32.totalorder %s1869_s8, %s1869_s8 }
  0x37   : > { %p1574_p0 = scmp.lt.s32.totalorder %s1572_s17, %s1565_s30 }
  0x38   : > { %p1568_p7 = pnand %p1566_p5, %p1526_p13 }
  0x39   : > { %p1575_p2 = por %p1574_p0, %p1573_p12 }
  0x3a   : > { %p1569_p9 = pneg %p1568_p7 }
  0x3c   : > { %p1576_p1 = pnand %p1575_p2, %p1569_p9 }
  0x3e   : > { %1579 = shalt.err (!%p1576_p1)
}
  0x3f   : > { %1443 = dma.hbm_to_vmem [thread:$0]  (!%p1865_p11), %s2620_s2, 16, %s1869_s8, [#allocation6]  }
  0x40   : > { %s38_s9 = sadd.s32 1, %s1752_s22  ;;  %s47_s10 = sadd.s32 1, %s1744_s20 }
  0x41   : > { %p40_p13 = scmp.ge.s32.totalorder %s38_s9, 2  ;;  %p54_p6 = scmp.ne.s32.totalorder %s1744_s20, %s1740_s19 }
  0x42   : > { %p55_p10 = scmp.eq.s32.totalorder %s1756_s23, 0  ;;  %p1460_p3 = scmp.lt.s32.totalorder %s1756_s23, 2 }
  0x43   : > { %s2651_s9 = smov (%p40_p13, %s38_s9), 0  ;;  %p2634_p7 = scmp.eq.s32.totalorder %s1833_s24, 1 }
  0x44   : > { %p56_p5 = por %p55_p10, %p54_p6  ;;  %s42_s11 = ssub.s32 %s1752_s22, %s2651_s9 }
  0x45   : > { %p1934_p9 = por %p2634_p7, %p54_p6  ;;  %s234_s12 = sand.u32 1, %s1744_s20  }
  0x46   : > { %p45_p12 = scmp.eq.s32.totalorder %s42_s11, 0  ;;  %s1255_s8 = sshll.u32 %s234_s12, 8 }
  0x47   : > { %s2635_s6 = scalar_select %p1934_p9, 1, 0 }
  0x48   : > { %s1327_s13 = sshll.u32 %s1752_s22, 12  ;;  %s238_s17 = scalar_lea.vmem [#allocation2], %s1255_s8 }
  0x49   : > { %s1943_s14 = scalar_select %p45_p12, %s1744_s20, %s47_s10  }
  0x4a   : > { %s1948_s30 = scalar_lea.hbm %s2618_s0, %s1327_s13  ;;  %s247_s29 = sshll.u32 %s238_s17, 4  ;;  %s1956_s29 = int_to_ptr.vmem [resolvable:$true] %s247_s29 }
  0x4b   : > { %p1952_p11 = pnand %p1460_p3, %p56_p5  ;;  %s1958_s10 = scalar_lea.sflag [#allocation3], %s234_s12 }
  0x4c   : > { %s1580_s11 = scalar_lea.hbm %s1948_s30, 4096  ;;  %s1585_s15 = scalar_lea.hbm %s2618_s0, 8192 }
  0x4d   : > { %p1581_p0 = scmp.ne.s32.totalorder %s1948_s30, %s1580_s11  ;;  %p1582_p2 = pneg %p1952_p11 }
  0x4e   : > { %p1586_p6 = scmp.lt.u32.totalorder %s1948_s30, %s2618_s0  ;;  %p1587_p10 = scmp.lt.u32.totalorder %s1585_s15, %s1580_s11 }
  0x4f   : > { %p1583_p1 = pnand %p1582_p2, %p1581_p0  ;;  %p1589_p5 = scmp.lt.u32.totalorder %s1580_s11, %s1948_s30 }
  0x50   : > { %p1588_p3 = por %p1587_p10, %p1586_p6 }
  0x51   : > { %p1584_p13 = pneg %p1583_p1 }
  0x52   : > { %p1590_p7 = por %p1589_p5, %p1588_p3 }
  0x54   : > { %p1591_p12 = pnand %p1590_p7, %p1584_p13 }
  0x56   : > { %1594 = shalt.err (!%p1591_p12)
}
  0x57   : > { %s1595_s12 = scalar_lea.vmem %s1956_s29, 4096  ;;  %s1762_s8 = smov [#allocation2]  }
  0x58   : > { %p1596_p0 = scmp.ne.s32.totalorder %s1956_s29, %s1595_s12  ;;  %s1600_s13 = sshll.u32 %s1762_s8, 4  ;;  %s1601_s13 = int_to_ptr.vmem [resolvable:$false] %s1600_s13 }
  0x59   : > { %s1602_s16 = scalar_lea.vmem %s1601_s13, 8192  ;;  %p1603_p4 = scmp.lt.s32.totalorder %s1956_s29, %s1601_s13 }
  0x5a   : > { %p1598_p1 = pnand %p1596_p0, %p1582_p2  ;;  %p1604_p6 = scmp.lt.s32.totalorder %s1602_s16, %s1595_s12 }
  0x5c   : > { %p1599_p9 = pneg %p1598_p1  ;;  %p1605_p10 = por %p1604_p6, %p1603_p4 }
  0x5e   : > { %p1606_p3 = pnand %p1605_p10, %p1599_p9 }
  0x60   : > { %1609 = shalt.err (!%p1606_p3)
}
  0x61   : > { %s1763_s11 = smov 128   ;;  %s1764_s15 = smov 8  }
  0x62   : > { %1447 = dma.hbm_to_vmem [thread:$0]  (!%p1952_p11), %s1948_s30, 4096, %s1956_s29, %s1958_s10, %s1763_s11, %s1763_s11, %s1764_s15  }
  0x63   : > { %259 = sbr.rel (%p1854_p8) target bundleno = 612 (0x264), region = 32  ;;  %s1989_s17 = sand.u32 (!%p1854_p8), 1, %s1740_s19  }
  0x64   : > { %s1259_s12 = sshll.u32 (!%p1854_p8), %s1989_s17, 8  ;;  %s262_s8 = scalar_lea.sflag (!%p1854_p8), [#allocation3], %s1989_s17 }
  0x65   : > { %s1993_s13 = scalar_lea.vmem (!%p1854_p8), [#allocation2], %s1259_s12  ;;  %p2637_p4 = scmp.ne.s32.totalorder (!%p1854_p8), %s2630_s26, 0 }
  0x6a   : > { %1719 = dma.done.wait (%p2637_p4), %s262_s8, 4096  }
  0x6b   : > { %1721 = vsyncadd (%p2637_p4), %s262_s8, 4294963200  ;;  %p2638_p9 = scmp.eq.s32.totalorder %s1833_s24, 0 }
  0x6d   : > { %1723 = dma.done.wait (%p2638_p9), [#allocation6], 272   ;;  %p2639_p8 = pmov %p2638_p9 }
  0x6e   : > { %v1522_v0 = vld [vmem:[#allocation5] sm:$0xff]   ;;  %v1523_v1 = vld [vmem:[#allocation5 + $0x8] sm:$0xff]   ;;  %vm386_vm0 = vcmask 261120   ;;  %v317_v7 = vld [vmem:[%s1993_s13 + $0x10] sm:$0xff]  ;;  %s2054_s26 = sshll.u32 %s1989_s17, 7  ;;  %vm724_vm1 = vcmask 27648  }
  0x6f   : > { %1725 = vsyncadd (%p2639_p8), [#allocation6], 4294967024  ;;  %1381 = vmatprep.subr.bf16.mxu0 %v1522_v0  ;;  %1417 = vmatprep.subr.bf16.mxu1 %v1522_v0  ;;  %v315_v2 = vld [vmem:[%s1993_s13] sm:$0xff]  ;;  %v316_v3 = vld [vmem:[%s1993_s13 + $0x8] sm:$0xff]  ;;  %s2069_s28 = scalar_lea.vmem [#allocation8], %s2054_s26  ;;  %s1765_s30 = smov 124  }
  0x70   : > { %v331_v4 = vld [vmem:[%s1993_s13 + $0x80] sm:$0xff]  ;;  %1382 = vmatpush3.bf16.msra.mxu0 %v1522_v0  ;;  %1419 = vmatpush3.bf16.msra.mxu1 %v1522_v0  ;;  %v347_v5 = vpack.c.bf16 %v316_v3, %v315_v2  ;;  %v332_v6 = vld [vmem:[%s1993_s13 + $0x88] sm:$0xff]  ;;  %v318_v8 = vld [vmem:[%s1993_s13 + $0x18] sm:$0xff]  ;;  %s2628_s29 = smov 120   ;;  %s2335_s7 = sshll.u32 %s1748_s21, 11  ;;  %vm981_vm2 = vcmask 257024  }
  0x71   : > { %1383 = vmatprep.subr.bf16.mxu0 %v1523_v1  ;;  %1418 = vmatprep.subr.bf16.mxu1 %v1523_v1  ;;  %v355_v9 = vpack.c.bf16 %v332_v6, %v331_v4  ;;  %v333_v10 = vld [vmem:[%s1993_s13 + $0x90] sm:$0xff]  ;;  %v334_v11 = vld [vmem:[%s1993_s13 + $0x98] sm:$0xff]  ;;  %v319_v12 = vld [vmem:[%s1993_s13 + $0x20] sm:$0xff]  ;;  %v348_v14 = vpack.c.bf16 %v318_v8, %v317_v7  ;;  %s2345_s11 = scalar_lea.hbm %s2621_s3, %s2335_s7  ;;  %s1040_s15 = sshll.u32 %s2069_s28, 4  ;;  %s2355_s15 = int_to_ptr.vmem [resolvable:$true] %s1040_s15 }
  0x72   : > { %1385 = vmatprep.mubr.msk.bf16.mxu0 %vm386_vm0, %v347_v5  ;;  %v320_v13 = vld [vmem:[%s1993_s13 + $0x28] sm:$0xff]  ;;  %v356_v15 = vpack.c.bf16 %v334_v11, %v333_v10  ;;  %v335_v16 = vld [vmem:[%s1993_s13 + $0xa0] sm:$0xff]  ;;  %v321_v20 = vld [vmem:[%s1993_s13 + $0x30] sm:$0xff]  ;;  %s2349_s12 = scalar_lea.vmem [#allocation9], %s2054_s26  ;;  %s1015_s21 = scalar_lea.sflag [#allocation4], %s1989_s17 }
  0x73   : > { %1401 = vmatprep.mubr.msk.bf16.mxu1 %vm386_vm0, %v355_v9  ;;  %v336_v17 = vld [vmem:[%s1993_s13 + $0xa8] sm:$0xff]  ;;  %v349_v18 = vpack.c.bf16 %v320_v13, %v319_v12  ;;  %v322_v21 = vld [vmem:[%s1993_s13 + $0x38] sm:$0xff]  ;;  %v337_v22 = vld [vmem:[%s1993_s13 + $0xb0] sm:$0xff]  ;;  %s1610_s8 = scalar_lea.vmem %s2355_s15, 2048  ;;  %p2640_p2 = scmp.ne.s32.totalorder %s2635_s6, 0 }
  0x74   : > { %1384 = vmatpush3.bf16.msra.mxu0 %v1523_v1  ;;  %1420 = vmatpush3.bf16.msra.mxu1 %v1523_v1  ;;  %v357_v19 = vpack.c.bf16 %v336_v17, %v335_v16  ;;  %v338_v23 = vld [vmem:[%s1993_s13 + $0xb8] sm:$0xff]  ;;  %v323_v24 = vld [vmem:[%s1993_s13 + $0x40] sm:$0xff]  ;;  %v324_v25 = vld [vmem:[%s1993_s13 + $0x48] sm:$0xff]  ;;  %v350_v28 = vpack.c.bf16 %v322_v21, %v321_v20  ;;  %p1611_p11 = scmp.ne.s32.totalorder %s2355_s15, %s1610_s8 }
  0x75   : > { %v339_v26 = vld [vmem:[%s1993_s13 + $0xc0] sm:$0xff]  ;;  %v340_v27 = vld [vmem:[%s1993_s13 + $0xc8] sm:$0xff]  ;;  %v358_v29 = vpack.c.bf16 %v338_v23, %v337_v22  ;;  %v351_v30 = vpack.c.bf16 %v324_v25, %v323_v24  ;;  %v325_v32 = vld [vmem:[%s1993_s13 + $0x50] sm:$0xff] }
  0x76   : > { %v359_v31 = vpack.c.bf16 %v340_v27, %v339_v26  ;;  %v326_v33 = vld [vmem:[%s1993_s13 + $0x58] sm:$0xff]  ;;  %v341_v34 = vld [vmem:[%s1993_s13 + $0xd0] sm:$0xff]  ;;  %v327_v36 = vld [vmem:[%s1993_s13 + $0x60] sm:$0xff]  ;;  %p1612_p13 = pnand %p1611_p11, %p2640_p2 }
  0x77   : > { %1386 = vmatmul.mubr.msk.bf16.vlgmr.msra.gmra.mrb[0].mxu0 %vm386_vm0, %v348_v14  ;;  %1402 = vmatmul.mubr.msk.bf16.vlgmr.msra.gmra.mrb[0].mxu1 %vm386_vm0, %v356_v15  ;;  %v342_v35 = vld [vmem:[%s1993_s13 + $0xd8] sm:$0xff]  ;;  %v328_v37 = vld [vmem:[%s1993_s13 + $0x68] sm:$0xff]  ;;  %v343_v38 = vld [vmem:[%s1993_s13 + $0xe0] sm:$0xff]  ;;  %v352_v40 = vpack.c.bf16 %v326_v33, %v325_v32 }
  0x78   : > { %1389 = vmatprep.mubr.msk.bf16.mxu0 %vm386_vm0, %v349_v18  ;;  %1405 = vmatprep.mubr.msk.bf16.mxu1 %vm386_vm0, %v357_v19  ;;  %v344_v39 = vld [vmem:[%s1993_s13 + $0xe8] sm:$0xff]  ;;  %v360_v41 = vpack.c.bf16 %v342_v35, %v341_v34  ;;  %v353_v42 = vpack.c.bf16 %v328_v37, %v327_v36  ;;  %v329_v44 = vld [vmem:[%s1993_s13 + $0x70] sm:$0xff]  ;;  %v330_v45 = vld [vmem:[%s1993_s13 + $0x78] sm:$0xff]  ;;  %p1613_p5 = pneg %p1612_p13 }
  0x79   : > { %v361_v43 = vpack.c.bf16 %v344_v39, %v343_v38  ;;  %v345_v46 = vld [vmem:[%s1993_s13 + $0xf0] sm:$0xff]  ;;  %v346_v47 = vld [vmem:[%s1993_s13 + $0xf8] sm:$0xff]  ;;  %v354_v48 = vpack.c.bf16 %v330_v45, %v329_v44  ;;  %s1767_s13 = smov [#allocation8]  }
  0x7a   : > { %v362_v49 = vpack.c.bf16 %v346_v47, %v345_v46  ;;  %v2051_v50 = vld [vmem:[#allocation7] ss:$0 sm:$0xff] }
  0x7f   : > { %1390 = vmatmul.mubr.msk.bf16.gmra.mrb[4].mxu0 %vm386_vm0, %v350_v28  ;;  %1406 = vmatmul.mubr.msk.bf16.gmra.mrb[4].mxu1 %vm386_vm0, %v358_v29 }
  0x80   : > { %1393 = vmatprep.mubr.msk.bf16.mxu0 %vm386_vm0, %v351_v30  ;;  %1409 = vmatprep.mubr.msk.bf16.mxu1 %vm386_vm0, %v359_v31 }
  0x87   : > { %1394 = vmatmul.mubr.msk.bf16.gmra.mrb[8].mxu0 %vm386_vm0, %v352_v40  ;;  %1410 = vmatmul.mubr.msk.bf16.gmra.mrb[8].mxu1 %vm386_vm0, %v360_v41 }
  0x88   : > { %1397 = vmatprep.mubr.msk.bf16.mxu0 %vm386_vm0, %v353_v42  ;;  %1413 = vmatprep.mubr.msk.bf16.mxu1 %vm386_vm0, %v361_v43 }
  0x8f   : > { %1398 = vmatmul.mubr.msk.bf16.gmra.mrb[12].mxu0 %vm386_vm0, %v354_v48  ;;  %1414 = vmatmul.mubr.msk.bf16.gmra.mrb[12].mxu1 %vm386_vm0, %v362_v49 }
 0x14a   : > { %v1387_v51 = vpop.f32.mrb[0].mxu0  ;;  %v1403_v52 = vpop.f32.mrb[0].mxu1 }
 0x14b   : > { %v478_v53 = vadd.f32 %v1387_v51, %v2051_v50  ;;  %v542_v54 = vadd.f32 %v1403_v52, %v2051_v50  ;;  %v469_v55 = vpop.f32.mrb[1].mxu0  ;;  %v533_v56 = vpop.f32.mrb[1].mxu1 }
 0x14c   : > { %v470_v57 = vadd.f32 %v2051_v50, %v469_v55  ;;  %v534_v58 = vadd.f32 %v2051_v50, %v533_v56  ;;  %v1388_v59 = vpop.f32.mrb[2].mxu0  ;;  %v1404_v60 = vpop.f32.mrb[2].mxu1 }
 0x14d   : > { %v1330_v61 = vpack.c.bf16 %v478_v53, %v478_v53  ;;  %v1346_v62 = vpack.c.bf16 %v542_v54, %v542_v54  ;;  %v481_v63 = vadd.f32 %v1388_v59, %v2051_v50  ;;  %v545_v0 = vadd.f32 %v1404_v60, %v2051_v50  ;;  %v472_v1 = vpop.f32.mrb[3].mxu0  ;;  %v536_v2 = vpop.f32.mrb[3].mxu1 }
 0x14e   : > { %v2062_v3 = vpack.c.bf16 %v470_v57, %v470_v57  ;;  %v2064_v4 = vpack.c.bf16 %v534_v58, %v534_v58  ;;  %v473_v5 = vadd.f32 %v2051_v50, %v472_v1  ;;  %v537_v6 = vadd.f32 %v2051_v50, %v536_v2 }
 0x14f   : > { %727 = vst.msk [vmem:[%s2069_s28 + $0x8] sm:$0xf] %vm724_vm1, %v1330_v61  ;;  %743 = vst.msk [vmem:[%s2069_s28 + $0x48] sm:$0xf] %vm724_vm1, %v1346_v62  ;;  %v1331_v7 = vpack.c.bf16 %v481_v63, %v481_v63  ;;  %v2075_v8 = vpack.c.bf16 %v545_v0, %v545_v0  ;;  %793 = vrot.lane.b32.xlu0 %v1346_v62, %s1765_s30  ;;  %761 = vrot.lane.b32.xlu1 %v1330_v61, %s1765_s30 }
 0x150   : > { %725 = vst.msk [vmem:[%s2069_s28] sm:$0xf] %vm724_vm1, %v2062_v3  ;;  %741 = vst.msk [vmem:[%s2069_s28 + $0x40] sm:$0xf] %vm724_vm1, %v2064_v4  ;;  %v2085_v9 = vpack.c.bf16 %v473_v5, %v473_v5  ;;  %v2087_v10 = vpack.c.bf16 %v537_v6, %v537_v6 }
 0x151   : > { %728 = vst.msk [vmem:[%s2069_s28 + $0xc] sm:$0xf] %vm724_vm1, %v1331_v7  ;;  %744 = vst.msk [vmem:[%s2069_s28 + $0x4c] sm:$0xf] %vm724_vm1, %v2075_v8 }
 0x152   : > { %726 = vst.msk [vmem:[%s2069_s28 + $0x4] sm:$0xf] %vm724_vm1, %v2085_v9  ;;  %742 = vst.msk [vmem:[%s2069_s28 + $0x44] sm:$0xf] %vm724_vm1, %v2087_v10  ;;  %v1391_v11 = vpop.f32.mrb[4].mxu0  ;;  %v1407_v12 = vpop.f32.mrb[4].mxu1 }
 0x153   : > { %889 = vrot.lane.b32.xlu0 %v1330_v61, %s2628_s29  ;;  %763 = vrot.lane.b32.xlu1 %v1331_v7, %s1765_s30  ;;  %v494_v13 = vadd.f32 %v1391_v11, %v2051_v50  ;;  %v485_v14 = vpop.f32.mrb[5].mxu0  ;;  %v558_v15 = vadd.f32 %v1407_v12, %v2051_v50  ;;  %v549_v16 = vpop.f32.mrb[5].mxu1 }
 0x154   : > { %v486_v17 = vadd.f32 %v2051_v50, %v485_v14  ;;  %v1392_v18 = vpop.f32.mrb[6].mxu0  ;;  %v550_v19 = vadd.f32 %v2051_v50, %v549_v16  ;;  %v1408_v20 = vpop.f32.mrb[6].mxu1 }
 0x155   : > { %v2106_v21 = vpack.c.bf16 %v494_v13, %v494_v13  ;;  %v497_v22 = vadd.f32 %v1392_v18, %v2051_v50  ;;  %v488_v23 = vpop.f32.mrb[7].mxu0  ;;  %v2109_v24 = vpack.c.bf16 %v558_v15, %v558_v15  ;;  %v561_v25 = vadd.f32 %v1408_v20, %v2051_v50  ;;  %v552_v26 = vpop.f32.mrb[7].mxu1 }
 0x156   : > { %v2112_v27 = vpack.c.bf16 %v486_v17, %v486_v17  ;;  %v489_v28 = vadd.f32 %v2051_v50, %v488_v23  ;;  %v2115_v29 = vpack.c.bf16 %v550_v19, %v550_v19  ;;  %v553_v30 = vadd.f32 %v2051_v50, %v552_v26 }
 0x157   : > { %921 = vrot.lane.b32.xlu0 %v1346_v62, %s2628_s29  ;;  %795 = vrot.lane.b32.xlu1 %v2075_v8, %s1765_s30  ;;  %731 = vst.msk [vmem:[%s2069_s28 + $0x18] sm:$0xf] %vm724_vm1, %v2106_v21  ;;  %v2124_v31 = vpack.c.bf16 %v497_v22, %v497_v22  ;;  %747 = vst.msk [vmem:[%s2069_s28 + $0x58] sm:$0xf] %vm724_vm1, %v2109_v24  ;;  %v2129_v32 = vpack.c.bf16 %v561_v25, %v561_v25 }
 0x158   : > { %729 = vst.msk [vmem:[%s2069_s28 + $0x10] sm:$0xf] %vm724_vm1, %v2112_v27  ;;  %v2134_v33 = vpack.c.bf16 %v489_v28, %v489_v28  ;;  %745 = vst.msk [vmem:[%s2069_s28 + $0x50] sm:$0xf] %vm724_vm1, %v2115_v29  ;;  %v2139_v34 = vpack.c.bf16 %v553_v30, %v553_v30 }
 0x159   : > { %732 = vst.msk [vmem:[%s2069_s28 + $0x1c] sm:$0xf] %vm724_vm1, %v2124_v31  ;;  %748 = vst.msk [vmem:[%s2069_s28 + $0x5c] sm:$0xf] %vm724_vm1, %v2129_v32 }
 0x15a   : > { %730 = vst.msk [vmem:[%s2069_s28 + $0x14] sm:$0xf] %vm724_vm1, %v2134_v33  ;;  %746 = vst.msk [vmem:[%s2069_s28 + $0x54] sm:$0xf] %vm724_vm1, %v2139_v34  ;;  %v1395_v35 = vpop.f32.mrb[8].mxu0  ;;  %v1411_v36 = vpop.f32.mrb[8].mxu1 }
 0x15b   : > { %891 = vrot.lane.b32.xlu1 %v1331_v7, %s2628_s29  ;;  %757 = vrot.lane.b32.xlu0 %v2062_v3, %s1765_s30  ;;  %v510_v37 = vadd.f32 %v1395_v35, %v2051_v50  ;;  %v501_v38 = vpop.f32.mrb[9].mxu0  ;;  %v574_v39 = vadd.f32 %v1411_v36, %v2051_v50  ;;  %v565_v40 = vpop.f32.mrb[9].mxu1 }
 0x15c   : > { %v502_v41 = vadd.f32 %v2051_v50, %v501_v38  ;;  %v1396_v42 = vpop.f32.mrb[10].mxu0  ;;  %v566_v43 = vadd.f32 %v2051_v50, %v565_v40  ;;  %v1412_v44 = vpop.f32.mrb[10].mxu1 }
 0x15d   : > { %v2160_v45 = vpack.c.bf16 %v510_v37, %v510_v37  ;;  %v513_v46 = vadd.f32 %v1396_v42, %v2051_v50  ;;  %v504_v47 = vpop.f32.mrb[11].mxu0  ;;  %v2163_v48 = vpack.c.bf16 %v574_v39, %v574_v39  ;;  %v577_v49 = vadd.f32 %v1412_v44, %v2051_v50  ;;  %v568_v51 = vpop.f32.mrb[11].mxu1 }
 0x15e   : > { %v2166_v52 = vpack.c.bf16 %v502_v41, %v502_v41  ;;  %v505_v53 = vadd.f32 %v2051_v50, %v504_v47  ;;  %v2169_v54 = vpack.c.bf16 %v566_v43, %v566_v43  ;;  %v569_v55 = vadd.f32 %v2051_v50, %v568_v51 }
 0x15f   : > { %923 = vrot.lane.b32.xlu1 %v2075_v8, %s2628_s29  ;;  %789 = vrot.lane.b32.xlu0 %v2064_v4, %s1765_s30  ;;  %735 = vst.msk [vmem:[%s2069_s28 + $0x28] sm:$0xf] %vm724_vm1, %v2160_v45  ;;  %v2179_v56 = vpack.c.bf16 %v513_v46, %v513_v46  ;;  %751 = vst.msk [vmem:[%s2069_s28 + $0x68] sm:$0xf] %vm724_vm1, %v2163_v48  ;;  %v2184_v57 = vpack.c.bf16 %v577_v49, %v577_v49 }
 0x160   : > { %733 = vst.msk [vmem:[%s2069_s28 + $0x20] sm:$0xf] %vm724_vm1, %v2166_v52  ;;  %v2189_v58 = vpack.c.bf16 %v505_v53, %v505_v53  ;;  %749 = vst.msk [vmem:[%s2069_s28 + $0x60] sm:$0xf] %vm724_vm1, %v2169_v54  ;;  %v2194_v59 = vpack.c.bf16 %v569_v55, %v569_v55 }
 0x161   : > { %736 = vst.msk [vmem:[%s2069_s28 + $0x2c] sm:$0xf] %vm724_vm1, %v2179_v56  ;;  %752 = vst.msk [vmem:[%s2069_s28 + $0x6c] sm:$0xf] %vm724_vm1, %v2184_v57 }
 0x162   : > { %734 = vst.msk [vmem:[%s2069_s28 + $0x24] sm:$0xf] %vm724_vm1, %v2189_v58  ;;  %750 = vst.msk [vmem:[%s2069_s28 + $0x64] sm:$0xf] %vm724_vm1, %v2194_v59  ;;  %v1399_v60 = vpop.f32.mrb[12].mxu0  ;;  %v1415_v61 = vpop.f32.mrb[12].mxu1 }
 0x163   : > { %791 = vrot.lane.b32.xlu1 %v2087_v10, %s1765_s30  ;;  %885 = vrot.lane.b32.xlu0 %v2062_v3, %s2628_s29  ;;  %v526_v62 = vadd.f32 %v1399_v60, %v2051_v50  ;;  %v517_v63 = vpop.f32.mrb[13].mxu0  ;;  %v590_v0 = vadd.f32 %v1415_v61, %v2051_v50  ;;  %v581_v1 = vpop.f32.mrb[13].mxu1 }
 0x164   : > { %v518_v2 = vadd.f32 %v2051_v50, %v517_v63  ;;  %v1400_v5 = vpop.f32.mrb[14].mxu0  ;;  %v582_v6 = vadd.f32 %v2051_v50, %v581_v1  ;;  %v1416_v7 = vpop.f32.mrb[14].mxu1 }
 0x165   : > { %v1342_v8 = vpack.c.bf16 %v526_v62, %v526_v62  ;;  %v529_v11 = vadd.f32 %v1400_v5, %v2051_v50  ;;  %v520_v12 = vpop.f32.mrb[15].mxu0  ;;  %v2217_v3 = vpack.c.bf16 %v590_v0, %v590_v0  ;;  %v593_v13 = vadd.f32 %v1416_v7, %v2051_v50  ;;  %v584_v14 = vpop.f32.mrb[15].mxu1 }
 0x166   : > { %v2220_v15 = vpack.c.bf16 %v518_v2, %v518_v2  ;;  %v521_v16 = vadd.f32 %v2051_v50, %v520_v12  ;;  %v2223_v17 = vpack.c.bf16 %v582_v6, %v582_v6  ;;  %v585_v18 = vadd.f32 %v2051_v50, %v584_v14 }
 0x167   : > { %887 = vrot.lane.b32.xlu1 %v2085_v9, %s2628_s29  ;;  %917 = vrot.lane.b32.xlu0 %v2064_v4, %s2628_s29  ;;  %739 = vst.msk [vmem:[%s2069_s28 + $0x38] sm:$0xf] %vm724_vm1, %v1342_v8  ;;  %v1343_v19 = vpack.c.bf16 %v529_v11, %v529_v11  ;;  %755 = vst.msk [vmem:[%s2069_s28 + $0x78] sm:$0xf] %vm724_vm1, %v2217_v3  ;;  %v2235_v20 = vpack.c.bf16 %v593_v13, %v593_v13 }
 0x168   : > { %737 = vst.msk [vmem:[%s2069_s28 + $0x30] sm:$0xf] %vm724_vm1, %v2220_v15  ;;  %v1341_v22 = vpack.c.bf16 %v521_v16, %v521_v16  ;;  %753 = vst.msk [vmem:[%s2069_s28 + $0x70] sm:$0xf] %vm724_vm1, %v2223_v17  ;;  %v2243_v50 = vpack.c.bf16 %v585_v18, %v585_v18 }
 0x169   : > { %740 = vst.msk [vmem:[%s2069_s28 + $0x3c] sm:$0xf] %vm724_vm1, %v1343_v19  ;;  %756 = vst.msk [vmem:[%s2069_s28 + $0x7c] sm:$0xf] %vm724_vm1, %v2235_v20 }
 0x16a   : > { %738 = vst.msk [vmem:[%s2069_s28 + $0x34] sm:$0xf] %vm724_vm1, %v1341_v22  ;;  %754 = vst.msk [vmem:[%s2069_s28 + $0x74] sm:$0xf] %vm724_vm1, %v2243_v50  ;;  %s1614_s28 = sshll.u32 %s1767_s13, 4  ;;  %s1615_s28 = int_to_ptr.vmem [resolvable:$false] %s1614_s28 }
 0x16b   : > { %919 = vrot.lane.b32.xlu1 %v2087_v10, %s2628_s29  ;;  %759 = vrot.lane.b32.xlu0 %v2085_v9, %s1765_s30  ;;  %p1617_p7 = scmp.lt.s32.totalorder %s2355_s15, %s1615_s28 }
 0x16f   : > { %771 = vrot.lane.b32.xlu1 %v2124_v31, %s1765_s30  ;;  %769 = vrot.lane.b32.xlu0 %v2106_v21, %s1765_s30 }
 0x173   : > { %803 = vrot.lane.b32.xlu1 %v2129_v32, %s1765_s30  ;;  %801 = vrot.lane.b32.xlu0 %v2109_v24, %s1765_s30 }
 0x177   : > { %899 = vrot.lane.b32.xlu1 %v2124_v31, %s2628_s29  ;;  %897 = vrot.lane.b32.xlu0 %v2106_v21, %s2628_s29 }
 0x17b   : > { %931 = vrot.lane.b32.xlu1 %v2129_v32, %s2628_s29  ;;  %929 = vrot.lane.b32.xlu0 %v2109_v24, %s2628_s29 }
 0x17f   : > { %767 = vrot.lane.b32.xlu1 %v2134_v33, %s1765_s30  ;;  %765 = vrot.lane.b32.xlu0 %v2112_v27, %s1765_s30 }
 0x183   : > { %799 = vrot.lane.b32.xlu1 %v2139_v34, %s1765_s30  ;;  %797 = vrot.lane.b32.xlu0 %v2115_v29, %s1765_s30 }
 0x187   : > { %895 = vrot.lane.b32.xlu1 %v2134_v33, %s2628_s29  ;;  %893 = vrot.lane.b32.xlu0 %v2112_v27, %s2628_s29 }
 0x18b   : > { %927 = vrot.lane.b32.xlu1 %v2139_v34, %s2628_s29  ;;  %925 = vrot.lane.b32.xlu0 %v2115_v29, %s2628_s29 }
 0x18f   : > { %779 = vrot.lane.b32.xlu1 %v2179_v56, %s1765_s30  ;;  %777 = vrot.lane.b32.xlu0 %v2160_v45, %s1765_s30 }
 0x193   : > { %811 = vrot.lane.b32.xlu1 %v2184_v57, %s1765_s30  ;;  %809 = vrot.lane.b32.xlu0 %v2163_v48, %s1765_s30 }
 0x197   : > { %907 = vrot.lane.b32.xlu1 %v2179_v56, %s2628_s29  ;;  %905 = vrot.lane.b32.xlu0 %v2160_v45, %s2628_s29 }
 0x19b   : > { %939 = vrot.lane.b32.xlu1 %v2184_v57, %s2628_s29  ;;  %937 = vrot.lane.b32.xlu0 %v2163_v48, %s2628_s29 }
 0x19f   : > { %775 = vrot.lane.b32.xlu1 %v2189_v58, %s1765_s30  ;;  %773 = vrot.lane.b32.xlu0 %v2166_v52, %s1765_s30 }
 0x1a3   : > { %807 = vrot.lane.b32.xlu1 %v2194_v59, %s1765_s30  ;;  %805 = vrot.lane.b32.xlu0 %v2169_v54, %s1765_s30 }
 0x1a7   : > { %903 = vrot.lane.b32.xlu1 %v2189_v58, %s2628_s29  ;;  %901 = vrot.lane.b32.xlu0 %v2166_v52, %s2628_s29 }
 0x1ab   : > { %935 = vrot.lane.b32.xlu1 %v2194_v59, %s2628_s29  ;;  %933 = vrot.lane.b32.xlu0 %v2169_v54, %s2628_s29 }
 0x1af   : > { %787 = vrot.lane.b32.xlu1 %v1343_v19, %s1765_s30  ;;  %785 = vrot.lane.b32.xlu0 %v1342_v8, %s1765_s30 }
 0x1b3   : > { %819 = vrot.lane.b32.xlu1 %v2235_v20, %s1765_s30  ;;  %817 = vrot.lane.b32.xlu0 %v2217_v3, %s1765_s30 }
 0x1b7   : > { %915 = vrot.lane.b32.xlu1 %v1343_v19, %s2628_s29  ;;  %913 = vrot.lane.b32.xlu0 %v1342_v8, %s2628_s29 }
 0x1bb   : > { %783 = vrot.lane.b32.xlu1 %v1341_v22, %s1765_s30  ;;  %781 = vrot.lane.b32.xlu0 %v2220_v15, %s1765_s30 }
 0x1bf   : > { %815 = vrot.lane.b32.xlu1 %v2243_v50, %s1765_s30  ;;  %813 = vrot.lane.b32.xlu0 %v2223_v17, %s1765_s30  ;;  %s1616_s30 = scalar_lea.vmem %s1615_s28, 4096 }
 0x1c0   : > { %p1618_p12 = scmp.lt.s32.totalorder %s1616_s30, %s1610_s8 }
 0x1c1   : > { %v794_v4 = vpop.permute.xlu0 %793  ;;  %v762_v9 = vpop.permute.xlu1 %761 }
 0x1c2   : > { %871 = vst.msk [vmem:[%s2349_s12 + $0x48] sm:$0xf] %vm724_vm1, %v794_v4  ;;  %855 = vst.msk [vmem:[%s2349_s12 + $0x8] sm:$0xf] %vm724_vm1, %v762_v9  ;;  %p1619_p0 = por %p1618_p12, %p1617_p7 }
 0x1c3   : > { %911 = vrot.lane.b32.xlu1 %v1341_v22, %s2628_s29  ;;  %909 = vrot.lane.b32.xlu0 %v2220_v15, %s2628_s29 }
 0x1c4   : > { %p1620_p1 = pnand %p1619_p0, %p1613_p5 }
 0x1c6   : > { %1623 = shalt.err (!%p1620_p1)
}
 0x1c7   : > { %s1624_s10 = scalar_lea.hbm %s2345_s11, 2048  ;;  %s1628_s13 = scalar_lea.hbm %s2621_s3, 4096 }
 0x1c8   : > { %p1625_p6 = scmp.ne.s32.totalorder %s2345_s11, %s1624_s10  ;;  %p1629_p4 = scmp.lt.u32.totalorder %s2345_s11, %s2621_s3 }
 0x1c9   : > { %p1630_p9 = scmp.lt.u32.totalorder %s1628_s13, %s1624_s10  ;;  %p1632_p11 = scmp.lt.u32.totalorder %s1624_s10, %s2345_s11 }
 0x1ca   : > { %p1626_p10 = pnand %p1625_p6, %p2640_p2 }
 0x1cb   : > { %p1631_p8 = por %p1630_p9, %p1629_p4 }
 0x1cc   : > { %p1627_p3 = pneg %p1626_p10 }
 0x1cd   : > { %p1633_p13 = por %p1632_p11, %p1631_p8 }
 0x1cf   : > { %p1634_p5 = pnand %p1633_p13, %p1627_p3 }
 0x1d1   : > { %1637 = shalt.err (!%p1634_p5)
}
 0x1d2   : > { %s1768_s8 = smov 64   ;;  %s1769_s25 = smov 4   ;;  %v890_v10 = vpop.permute.xlu0 %889  ;;  %v764_v21 = vpop.permute.xlu1 %763 }
 0x1d3   : > { %1431 = dma.vmem_to_hbm [thread:$0]  (%p2640_p2), %s2355_s15, 2048, %s2345_s11, %s1015_s21, %s1768_s8, %s1768_s8, %s1769_s25  }
 0x1d4   : > { %s2388_s29 = scalar_lea.vmem [#allocation11], %s2054_s26  ;;  %856 = vst.msk [vmem:[%s2349_s12 + $0xc] sm:$0xf] %vm724_vm1, %v764_v21  ;;  %s2641_s30 = smov 120  }
 0x1d5   : > { %984 = vst.msk [vmem:[%s2388_s29 + $0x8] sm:$0xf] %vm981_vm2, %v890_v10  ;;  %943 = vrot.lane.b32.xlu1 %v2243_v50, %s2641_s30  ;;  %941 = vrot.lane.b32.xlu0 %v2223_v17, %s2641_s30  ;;  %s1019_s17 = sand.u32 1, %s1833_s24   ;;  %s1058_s26 = sshll.u32 %s2349_s12, 4  ;;  %s2514_s26 = int_to_ptr.vmem [resolvable:$true] %s1058_s26 }
 0x1d6   : > { %v922_v23 = vpop.permute.xlu0 %921  ;;  %v796_v24 = vpop.permute.xlu1 %795  ;;  %s2512_s21 = scalar_lea.hbm %s2622_s4, %s2335_s7  ;;  %s2520_s24 = scalar_lea.sflag [#allocation10], %s1019_s17 }
 0x1d7   : > { %1000 = vst.msk [vmem:[%s2388_s29 + $0x48] sm:$0xf] %vm981_vm2, %v922_v23  ;;  %s1638_s10 = scalar_lea.vmem %s2514_s26, 2048  ;;  %s1770_s16 = smov [#allocation9]  }
 0x1d8   : > { %872 = vst.msk [vmem:[%s2349_s12 + $0x4c] sm:$0xf] %vm724_vm1, %v796_v24  ;;  %p1639_p7 = scmp.ne.s32.totalorder %s2514_s26, %s1638_s10  ;;  %s1642_s13 = sshll.u32 %s1770_s16, 4  ;;  %s1643_s13 = int_to_ptr.vmem [resolvable:$false] %s1642_s13 }
 0x1d9   : > { %947 = vrot.lane.b32.xlu1 %v2235_v20, %s2641_s30  ;;  %945 = vrot.lane.b32.xlu0 %v2217_v3, %s2641_s30  ;;  %s1644_s28 = scalar_lea.vmem %s1643_s13, 4096  ;;  %p1645_p1 = scmp.lt.s32.totalorder %s2514_s26, %s1643_s13 }
 0x1da   : > { %v892_v25 = vpop.permute.xlu1 %891  ;;  %v758_v26 = vpop.permute.xlu0 %757  ;;  %p1640_p12 = pnand %p1639_p7, %p2640_p2  ;;  %p1646_p6 = scmp.lt.s32.totalorder %s1644_s28, %s1638_s10 }
 0x1db   : > { %985 = vst.msk [vmem:[%s2388_s29 + $0xc] sm:$0xf] %vm981_vm2, %v892_v25 }
 0x1dc   : > { %853 = vst.msk [vmem:[%s2349_s12] sm:$0xf] %vm724_vm1, %v758_v26  ;;  %p1641_p0 = pneg %p1640_p12  ;;  %p1647_p10 = por %p1646_p6, %p1645_p1 }
 0x1de   : > { %v924_v27 = vpop.permute.xlu1 %923  ;;  %v790_v28 = vpop.permute.xlu0 %789  ;;  %p1648_p3 = pnand %p1647_p10, %p1641_p0 }
 0x1df   : > { %1001 = vst.msk [vmem:[%s2388_s29 + $0x4c] sm:$0xf] %vm981_vm2, %v924_v27 }
 0x1e0   : > { %869 = vst.msk [vmem:[%s2349_s12 + $0x40] sm:$0xf] %vm724_vm1, %v790_v28 }
 0x1e2   : > { %v792_v29 = vpop.permute.xlu1 %791  ;;  %v886_v30 = vpop.permute.xlu0 %885 }
 0x1e3   : > { %870 = vst.msk [vmem:[%s2349_s12 + $0x44] sm:$0xf] %vm724_vm1, %v792_v29 }
 0x1e4   : > { %982 = vst.msk [vmem:[%s2388_s29] sm:$0xf] %vm981_vm2, %v886_v30 }
 0x1e6   : > { %v888_v31 = vpop.permute.xlu1 %887  ;;  %v918_v32 = vpop.permute.xlu0 %917 }
 0x1e7   : > { %983 = vst.msk [vmem:[%s2388_s29 + $0x4] sm:$0xf] %vm981_vm2, %v888_v31  ;;  %998 = vst.msk [vmem:[%s2388_s29 + $0x40] sm:$0xf] %vm981_vm2, %v918_v32 }
 0x1ea   : > { %v920_v33 = vpop.permute.xlu1 %919  ;;  %v760_v34 = vpop.permute.xlu0 %759 }
 0x1eb   : > { %999 = vst.msk [vmem:[%s2388_s29 + $0x44] sm:$0xf] %vm981_vm2, %v920_v33 }
 0x1ec   : > { %854 = vst.msk [vmem:[%s2349_s12 + $0x4] sm:$0xf] %vm724_vm1, %v760_v34 }
 0x1ee   : > { %v772_v35 = vpop.permute.xlu1 %771  ;;  %v770_v36 = vpop.permute.xlu0 %769 }
 0x1ef   : > { %860 = vst.msk [vmem:[%s2349_s12 + $0x1c] sm:$0xf] %vm724_vm1, %v772_v35  ;;  %859 = vst.msk [vmem:[%s2349_s12 + $0x18] sm:$0xf] %vm724_vm1, %v770_v36 }
 0x1f2   : > { %v804_v37 = vpop.permute.xlu1 %803  ;;  %v802_v38 = vpop.permute.xlu0 %801 }
 0x1f3   : > { %876 = vst.msk [vmem:[%s2349_s12 + $0x5c] sm:$0xf] %vm724_vm1, %v804_v37  ;;  %875 = vst.msk [vmem:[%s2349_s12 + $0x58] sm:$0xf] %vm724_vm1, %v802_v38 }
 0x1f6   : > { %v900_v39 = vpop.permute.xlu1 %899  ;;  %v898_v40 = vpop.permute.xlu0 %897 }
 0x1f7   : > { %989 = vst.msk [vmem:[%s2388_s29 + $0x1c] sm:$0xf] %vm981_vm2, %v900_v39  ;;  %988 = vst.msk [vmem:[%s2388_s29 + $0x18] sm:$0xf] %vm981_vm2, %v898_v40 }
 0x1fa   : > { %v932_v41 = vpop.permute.xlu1 %931  ;;  %v930_v42 = vpop.permute.xlu0 %929 }
 0x1fb   : > { %1005 = vst.msk [vmem:[%s2388_s29 + $0x5c] sm:$0xf] %vm981_vm2, %v932_v41  ;;  %1004 = vst.msk [vmem:[%s2388_s29 + $0x58] sm:$0xf] %vm981_vm2, %v930_v42 }
 0x1fe   : > { %v768_v43 = vpop.permute.xlu1 %767  ;;  %v766_v44 = vpop.permute.xlu0 %765 }
 0x1ff   : > { %858 = vst.msk [vmem:[%s2349_s12 + $0x14] sm:$0xf] %vm724_vm1, %v768_v43  ;;  %857 = vst.msk [vmem:[%s2349_s12 + $0x10] sm:$0xf] %vm724_vm1, %v766_v44 }
 0x202   : > { %v800_v45 = vpop.permute.xlu1 %799  ;;  %v798_v46 = vpop.permute.xlu0 %797 }
 0x203   : > { %874 = vst.msk [vmem:[%s2349_s12 + $0x54] sm:$0xf] %vm724_vm1, %v800_v45  ;;  %873 = vst.msk [vmem:[%s2349_s12 + $0x50] sm:$0xf] %vm724_vm1, %v798_v46 }
 0x206   : > { %v896_v47 = vpop.permute.xlu1 %895  ;;  %v894_v48 = vpop.permute.xlu0 %893 }
 0x207   : > { %987 = vst.msk [vmem:[%s2388_s29 + $0x14] sm:$0xf] %vm981_vm2, %v896_v47  ;;  %986 = vst.msk [vmem:[%s2388_s29 + $0x10] sm:$0xf] %vm981_vm2, %v894_v48 }
 0x20a   : > { %v928_v49 = vpop.permute.xlu1 %927  ;;  %v926_v51 = vpop.permute.xlu0 %925 }
 0x20b   : > { %1003 = vst.msk [vmem:[%s2388_s29 + $0x54] sm:$0xf] %vm981_vm2, %v928_v49  ;;  %1002 = vst.msk [vmem:[%s2388_s29 + $0x50] sm:$0xf] %vm981_vm2, %v926_v51 }
 0x20e   : > { %v780_v52 = vpop.permute.xlu1 %779  ;;  %v778_v53 = vpop.permute.xlu0 %777 }
 0x20f   : > { %864 = vst.msk [vmem:[%s2349_s12 + $0x2c] sm:$0xf] %vm724_vm1, %v780_v52  ;;  %863 = vst.msk [vmem:[%s2349_s12 + $0x28] sm:$0xf] %vm724_vm1, %v778_v53 }
 0x212   : > { %v812_v54 = vpop.permute.xlu1 %811  ;;  %v810_v55 = vpop.permute.xlu0 %809 }
 0x213   : > { %880 = vst.msk [vmem:[%s2349_s12 + $0x6c] sm:$0xf] %vm724_vm1, %v812_v54  ;;  %879 = vst.msk [vmem:[%s2349_s12 + $0x68] sm:$0xf] %vm724_vm1, %v810_v55 }
 0x216   : > { %v908_v56 = vpop.permute.xlu1 %907  ;;  %v906_v57 = vpop.permute.xlu0 %905 }
 0x217   : > { %993 = vst.msk [vmem:[%s2388_s29 + $0x2c] sm:$0xf] %vm981_vm2, %v908_v56  ;;  %992 = vst.msk [vmem:[%s2388_s29 + $0x28] sm:$0xf] %vm981_vm2, %v906_v57 }
 0x21a   : > { %v940_v58 = vpop.permute.xlu1 %939  ;;  %v938_v59 = vpop.permute.xlu0 %937 }
 0x21b   : > { %1009 = vst.msk [vmem:[%s2388_s29 + $0x6c] sm:$0xf] %vm981_vm2, %v940_v58  ;;  %1008 = vst.msk [vmem:[%s2388_s29 + $0x68] sm:$0xf] %vm981_vm2, %v938_v59 }
 0x21e   : > { %v776_v60 = vpop.permute.xlu1 %775  ;;  %v774_v61 = vpop.permute.xlu0 %773 }
 0x21f   : > { %862 = vst.msk [vmem:[%s2349_s12 + $0x24] sm:$0xf] %vm724_vm1, %v776_v60  ;;  %861 = vst.msk [vmem:[%s2349_s12 + $0x20] sm:$0xf] %vm724_vm1, %v774_v61 }
 0x222   : > { %v808_v62 = vpop.permute.xlu1 %807  ;;  %v806_v63 = vpop.permute.xlu0 %805 }
 0x223   : > { %878 = vst.msk [vmem:[%s2349_s12 + $0x64] sm:$0xf] %vm724_vm1, %v808_v62  ;;  %877 = vst.msk [vmem:[%s2349_s12 + $0x60] sm:$0xf] %vm724_vm1, %v806_v63 }
 0x226   : > { %v904_v0 = vpop.permute.xlu1 %903  ;;  %v902_v1 = vpop.permute.xlu0 %901 }
 0x227   : > { %991 = vst.msk [vmem:[%s2388_s29 + $0x24] sm:$0xf] %vm981_vm2, %v904_v0  ;;  %990 = vst.msk [vmem:[%s2388_s29 + $0x20] sm:$0xf] %vm981_vm2, %v902_v1 }
 0x22a   : > { %v936_v2 = vpop.permute.xlu1 %935  ;;  %v934_v5 = vpop.permute.xlu0 %933 }
 0x22b   : > { %1007 = vst.msk [vmem:[%s2388_s29 + $0x64] sm:$0xf] %vm981_vm2, %v936_v2  ;;  %1006 = vst.msk [vmem:[%s2388_s29 + $0x60] sm:$0xf] %vm981_vm2, %v934_v5 }
 0x22e   : > { %v788_v6 = vpop.permute.xlu1 %787  ;;  %v786_v7 = vpop.permute.xlu0 %785 }
 0x22f   : > { %868 = vst.msk [vmem:[%s2349_s12 + $0x3c] sm:$0xf] %vm724_vm1, %v788_v6  ;;  %867 = vst.msk [vmem:[%s2349_s12 + $0x38] sm:$0xf] %vm724_vm1, %v786_v7 }
 0x232   : > { %v820_v8 = vpop.permute.xlu1 %819  ;;  %v818_v11 = vpop.permute.xlu0 %817 }
 0x233   : > { %884 = vst.msk [vmem:[%s2349_s12 + $0x7c] sm:$0xf] %vm724_vm1, %v820_v8  ;;  %883 = vst.msk [vmem:[%s2349_s12 + $0x78] sm:$0xf] %vm724_vm1, %v818_v11 }
 0x236   : > { %v916_v12 = vpop.permute.xlu1 %915  ;;  %v914_v3 = vpop.permute.xlu0 %913 }
 0x237   : > { %997 = vst.msk [vmem:[%s2388_s29 + $0x3c] sm:$0xf] %vm981_vm2, %v916_v12  ;;  %996 = vst.msk [vmem:[%s2388_s29 + $0x38] sm:$0xf] %vm981_vm2, %v914_v3 }
 0x23a   : > { %v784_v13 = vpop.permute.xlu1 %783  ;;  %v782_v14 = vpop.permute.xlu0 %781 }
 0x23b   : > { %866 = vst.msk [vmem:[%s2349_s12 + $0x34] sm:$0xf] %vm724_vm1, %v784_v13  ;;  %865 = vst.msk [vmem:[%s2349_s12 + $0x30] sm:$0xf] %vm724_vm1, %v782_v14 }
 0x23e   : > { %v816_v15 = vpop.permute.xlu1 %815  ;;  %v814_v16 = vpop.permute.xlu0 %813 }
 0x23f   : > { %882 = vst.msk [vmem:[%s2349_s12 + $0x74] sm:$0xf] %vm724_vm1, %v816_v15  ;;  %881 = vst.msk [vmem:[%s2349_s12 + $0x70] sm:$0xf] %vm724_vm1, %v814_v16 }
 0x240   : > { %1651 = shalt.err (!%p1648_p3)
}
 0x241   : > { %s1652_s12 = scalar_lea.hbm %s2512_s21, 2048  ;;  %s1656_s11 = scalar_lea.hbm %s2622_s4, 4096 }
 0x242   : > { %p1653_p4 = scmp.ne.s32.totalorder %s2512_s21, %s1652_s12  ;;  %p1657_p11 = scmp.lt.u32.totalorder %s2512_s21, %s2622_s4 }
 0x243   : > { %p1658_p13 = scmp.lt.u32.totalorder %s1656_s11, %s1652_s12  ;;  %p1660_p7 = scmp.lt.u32.totalorder %s1652_s12, %s2512_s21 }
 0x244   : > { %p1654_p9 = pnand %p1653_p4, %p2640_p2 }
 0x245   : > { %p1659_p5 = por %p1658_p13, %p1657_p11 }
 0x246   : > { %p1655_p8 = pneg %p1654_p9 }
 0x247   : > { %p1661_p12 = por %p1660_p7, %p1659_p5 }
 0x249   : > { %p1662_p0 = pnand %p1661_p12, %p1655_p8 }
 0x24b   : > { %1665 = shalt.err (!%p1662_p0)
}
 0x24c   : > { %1432 = dma.vmem_to_hbm [thread:$0]  (%p2640_p2), %s2514_s26, 2048, %s2512_s21, %s2520_s24, %s1768_s8, %s1768_s8, %s1769_s25   ;;  %v912_v17 = vpop.permute.xlu1 %911  ;;  %v910_v18 = vpop.permute.xlu0 %909 }
 0x24d   : > { %995 = vst.msk [vmem:[%s2388_s29 + $0x34] sm:$0xf] %vm981_vm2, %v912_v17  ;;  %994 = vst.msk [vmem:[%s2388_s29 + $0x30] sm:$0xf] %vm981_vm2, %v910_v18  ;;  %s1076_s10 = sshll.u32 %s2388_s29, 4  ;;  %s2560_s12 = scalar_lea.hbm %s2623_s5, %s2335_s7  ;;  %s2562_s10 = int_to_ptr.vmem [resolvable:$true] %s1076_s10 }
 0x24e   : > { %s1666_s26 = scalar_lea.vmem %s2562_s10, 2048  ;;  %s1771_s21 = smov [#allocation11]  }
 0x24f   : > { %p1667_p1 = scmp.ne.s32.totalorder %s2562_s10, %s1666_s26  ;;  %s1670_s30 = sshll.u32 %s1771_s21, 4  ;;  %s1671_s30 = int_to_ptr.vmem [resolvable:$false] %s1670_s30 }
 0x250   : > { %v944_v19 = vpop.permute.xlu1 %943  ;;  %v942_v20 = vpop.permute.xlu0 %941  ;;  %s1672_s7 = scalar_lea.vmem %s1671_s30, 4096  ;;  %p1673_p3 = scmp.lt.s32.totalorder %s2562_s10, %s1671_s30 }
 0x251   : > { %1011 = vst.msk [vmem:[%s2388_s29 + $0x74] sm:$0xf] %vm981_vm2, %v944_v19  ;;  %1010 = vst.msk [vmem:[%s2388_s29 + $0x70] sm:$0xf] %vm981_vm2, %v942_v20  ;;  %p1668_p6 = pnand %p1667_p1, %p2640_p2  ;;  %p1674_p4 = scmp.lt.s32.totalorder %s1672_s7, %s1666_s26 }
 0x253   : > { %p1669_p10 = pneg %p1668_p6  ;;  %p1675_p9 = por %p1674_p4, %p1673_p3 }
 0x254   : > { %v948_v22 = vpop.permute.xlu1 %947  ;;  %v946_v50 = vpop.permute.xlu0 %945 }
 0x255   : > { %1013 = vst.msk [vmem:[%s2388_s29 + $0x7c] sm:$0xf] %vm981_vm2, %v948_v22  ;;  %1012 = vst.msk [vmem:[%s2388_s29 + $0x78] sm:$0xf] %vm981_vm2, %v946_v50  ;;  %p1676_p8 = pnand %p1675_p9, %p1669_p10 }
 0x257   : > { %1679 = shalt.err (!%p1676_p8)
}
 0x258   : > { %s1680_s29 = scalar_lea.hbm %s2560_s12, 2048  ;;  %s1684_s15 = scalar_lea.hbm %s2623_s5, 4096 }
 0x259   : > { %p1681_p11 = scmp.ne.s32.totalorder %s2560_s12, %s1680_s29  ;;  %p1685_p7 = scmp.lt.u32.totalorder %s2560_s12, %s2623_s5 }
 0x25a   : > { %p1686_p12 = scmp.lt.u32.totalorder %s1684_s15, %s1680_s29  ;;  %p1688_p1 = scmp.lt.u32.totalorder %s1680_s29, %s2560_s12 }
 0x25b   : > { %p1682_p13 = pnand %p1681_p11, %p2640_p2 }
 0x25c   : > { %p1687_p0 = por %p1686_p12, %p1685_p7 }
 0x25d   : > { %p1683_p5 = pneg %p1682_p13 }
 0x25e   : > { %p1689_p6 = por %p1688_p1, %p1687_p0 }
 0x260   : > { %p1690_p10 = pnand %p1689_p6, %p1683_p5 }
 0x262   : > { %1693 = shalt.err (!%p1690_p10)
}
 0x263   : > { %1433 = dma.vmem_to_hbm [thread:$0]  (%p2640_p2), %s2562_s10, 2048, %s2560_s12, %s2520_s24, %s1768_s8, %s1768_s8, %s1769_s25  }
 0x264 PF: > { %s1091_s28 = sand.u32 1, %s1736_s18   ;;  %p2642_p3 = scmp.ne.s32.totalorder %s2631_s27, 0 }
 0x265   : > { %p2643_p4 = scmp.ge.s32.totalorder %s1756_s23, 2  ;;  %s1092_s26 = scalar_lea.sflag [#allocation4], %s1091_s28 }
 0x267   : > { %p1449_p9 = pnand %p2643_p4, %p2642_p3 }
 0x269   : > { %1727 = dma.done.wait (!%p1449_p9), %s1092_s26, 2048  }
 0x26a   : > { %1729 = vsyncadd (!%p1449_p9), %s1092_s26, 4294965248  ;;  %s2644_s6 = sadd.s32 4294967294, %s1756_s23  }
 0x26b   : > { %s1100_s21 = sand.u32 1, %s2644_s6  }
 0x26c   : > { %s1101_s30 = scalar_lea.sflag [#allocation10], %s1100_s21 }
 0x26d   : > { %1731 = dma.done.wait (!%p1449_p9), %s1101_s30, 4096  }
 0x26e   : > { %1733 = vsyncadd (!%p1449_p9), %s1101_s30, 4294963200  ;;  %s26_s23 = sadd.s32 1, %s1756_s23   ;;  %s2645_s18 = smov %s1740_s19 }
 0x26f   : > { %p23_p2 = scmp.ge.s32.totalorder %s26_s23, 4   ;;  %s2646_s19 = smov %s1744_s20 }
 0x270   : > { %s2647_s20 = smov %s1943_s14  ;;  %s2648_s21 = smov %s1752_s22 }
 0x271   : > { %s2649_s22 = smov %s2651_s9  ;;  %25 = sbr.rel (!%p23_p2) target bundleno = 9 (0x9), region = 117 }
 0x278   :  { %1115 = vsyncpa [#allocation3], 1 }
 0x279   :  { %1117 = vsyncpa [#allocation3 + $0x1], 1 }
 0x27a   :  { %1118 = vsyncpa [#allocation6], 1 }
 0x27b   :  { %1119 = vsyncpa [#allocation4], 1 }
 0x27c   :  { %1121 = vsyncpa [#allocation4 + $0x1], 1 }
 0x27d   :  { %1122 = vsyncpa [#allocation10], 1 }
 0x27e   :  { %1124 = vsyncpa [#allocation10 + $0x1], 1 }

</bundles_post_ra>
